<compile_context>
chip_gen: v7x
topology: tpu7x:2x2x1
jax: 0.10.0
libtpu: 0.0.40
codegen_flags: <defaults>
</compile_context>

<pallas_src>
import jax
import jax.numpy as jnp
from jax import lax
from jax.experimental import pallas as pl
from jax.experimental.pallas import tpu as pltpu

_EPS = 1e-13 + 1e-14  # matches l2norm's (eps + 1e-14)


def _inv_l2norm(x32):
    """Per-row 1/(||x||_2 + eps) for an (R, D) f32 tile -> (R, 1)."""
    denom = jnp.sqrt(jnp.sum(x32 * x32, axis=1, keepdims=True)) + _EPS
    inv = pl.reciprocal(denom, approx=True)   # EUP slot (otherwise idle)
    inv = inv * (2.0 - denom * inv)           # one Newton step -> ~f32 accuracy
    return inv


def _make_kernel(B, D, tm, margin, mxu_dtype):
    def kernel(s_ref, im_ref, out_ref, s_n_ref, inv_im_ref, dcol_ref, drow_ref):
        i = pl.program_id(0)

        # ---- grid step 0: normalize s once, precompute im inverse-norms and
        #      the diagonal as a (B,1) column and a (1,B) row; zero accumulator.
        @pl.when(i == 0)
        def _init():
            s32 = s_ref[...].astype(jnp.float32)
            im32 = im_ref[...].astype(jnp.float32)
            inv_s = _inv_l2norm(s32)                # (B,1)
            inv_im = _inv_l2norm(im32)              # (B,1)
            s_n32 = s32 * inv_s
            im_n32 = im32 * inv_im
            s_n_ref[...] = s_n32.astype(mxu_dtype)
            inv_im_ref[...] = inv_im
            prod = im_n32 * s_n32                   # (B,D); row-sum == diag(scores)
            dcol_ref[...] = jnp.sum(prod, axis=1, keepdims=True)        # (B,1)
            # (1,B) diagonal without a skinny transpose: contract D with ones row.
            drow_ref[...] = lax.dot_general(
                jnp.ones((1, D), jnp.float32), prod,
                dimension_numbers=(((1,), (1,)), ((), ())),
                preferred_element_type=jnp.float32)                      # (1,B)
            out_ref[...] = jnp.zeros_like(out_ref)

        # ---- per row-tile: scores tile, fused hinge costs, 1 mask + 1 reduce.
        row0 = pl.multiple_of(i * tm, tm)
        im_t = im_ref[pl.ds(row0, tm), :].astype(jnp.float32)
        im_n_t = (im_t * inv_im_ref[pl.ds(row0, tm), :]).astype(mxu_dtype)

        scores = lax.dot_general(                   # (tm, B) = im_n_t @ s_n.T
            im_n_t, s_n_ref[...],
            dimension_numbers=(((1,), (1,)), ((), ())),
            preferred_element_type=jnp.float32)

        d1 = dcol_ref[pl.ds(row0, tm), :]           # (tm,1) -> broadcast over cols
        d2 = drow_ref[...]                          # (1,B)  -> broadcast over rows

        t = scores
        if margin != 0.0:                           # static (trace-time) branch
            t = t + margin
        cost = jnp.maximum(t - d1, 0.0) + jnp.maximum(t - d2, 0.0)

        rows = lax.broadcasted_iota(jnp.int32, (tm, B), 0) + i * tm
        cols = lax.broadcasted_iota(jnp.int32, (tm, B), 1)
        cost = jnp.where(rows == cols, 0.0, cost)   # single eye mask

        partial = jnp.sum(jnp.sum(cost, axis=1, keepdims=True),
                          axis=0, keepdims=True)    # (1,1)
        out_ref[...] = out_ref[...] + partial       # resident accumulator block

    return kernel


def _pick_tile(B, tile_rows=None):
    if tile_rows is not None:
        if B % tile_rows != 0:
            raise ValueError("tile_rows must divide the batch size")
        return tile_rows
    if B % 8 != 0:
        return B
    for t in (256, 128, 64, 32, 16, 8):   # 256-aligned preferred (v6e/v7x MXU)
        if B % t == 0:
            return t
    return B


def margin_ranking_loss(s, im, margin=0.0, cost_style="sum", tile_rows=None):
    """MarginRankingLoss.forward (cosine / bidir / no max_violation).

    s, im: (B, D) arrays (f32 or bf16). Returns a scalar f32 loss.
    """
    assert s.ndim == 2 and s.shape == im.shape
    B, D = s.shape
    tm = _pick_tile(B, tile_rows)
    n_tiles = B // tm

    # bf16 operands double MXU throughput on v6e/v7x; accumulation stays f32.
    mxu_dtype = jnp.bfloat16 if s.dtype == jnp.dtype(jnp.bfloat16) else jnp.float32

    # Rough padded VMEM budget (inputs counted double-buffered); keep explicit so
    # the same tile plan is auditable against v7x's 64 MiB physical VMEM.
    rup = lambda x, m: -(-x // m) * m
    in_bytes = s.dtype.itemsize
    lane_D, lane_B = rup(D, 128), rup(B, 128)
    sub_B, sub_tm = rup(B, 8), rup(tm, 8)
    est = (2 * 2 * sub_B * lane_D * in_bytes                   # s, im windows
           + sub_B * lane_D * jnp.dtype(mxu_dtype).itemsize    # s_n scratch
           + 3 * sub_B * 128 * 4 + 8 * lane_B * 4              # inv_im, dcol, drow
           + 8 * sub_tm * lane_B * 4                           # (tm,B) intermediates
           + (2 << 20))
    vmem_limit = int(min(max(est, 32 << 20), 112 << 20))

    out = pl.pallas_call(
        _make_kernel(B, D, tm, float(margin), mxu_dtype),
        out_shape=jax.ShapeDtypeStruct((1, 1), jnp.float32),
        grid_spec=pltpu.PrefetchScalarGridSpec(
            num_scalar_prefetch=0,
            grid=(n_tiles,),
            in_specs=[
                pl.BlockSpec((B, D), lambda i: (0, 0)),  # s : resident, DMA'd once
                pl.BlockSpec((B, D), lambda i: (0, 0)),  # im: resident, DMA'd once
            ],
            out_specs=pl.BlockSpec((1, 1), lambda i: (0, 0)),  # resident accumulator
            scratch_shapes=[
                pltpu.VMEM((B, D), mxu_dtype),     # s_n
                pltpu.VMEM((B, 1), jnp.float32),   # 1 / ||im||
                pltpu.VMEM((B, 1), jnp.float32),   # diag as column (d1)
                pltpu.VMEM((1, B), jnp.float32),   # diag as row    (d2)
            ]),
        compiler_params=pltpu.CompilerParams(
            # single grid axis carries the accumulator -> "arbitrary"
            dimension_semantics=("arbitrary",),
            vmem_limit_bytes=vmem_limit),
    )(s, im)

    loss = out[0, 0]
    if cost_style == "mean":
        loss = loss / jnp.float32(B * B)
    return loss


def _reference(s, im, margin=0.0):
    """Pure-JAX mirror of the PyTorch module (cosine / bidir / sum)."""
    s32, im32 = s.astype(jnp.float32), im.astype(jnp.float32)
    s_n = s32 / (jnp.sqrt(jnp.sum(s32 * s32, axis=1, keepdims=True)) + _EPS)
    im_n = im32 / (jnp.sqrt(jnp.sum(im32 * im32, axis=1, keepdims=True)) + _EPS)
    scores = jnp.matmul(im_n, s_n.T, precision=lax.Precision.HIGHEST)
    diag = jnp.diagonal(scores)[:, None]
    eye = jnp.eye(scores.shape[0], dtype=bool)
    cost_s = jnp.where(eye, 0.0, jnp.maximum(margin + scores - diag, 0.0))
    cost_im = jnp.where(eye, 0.0, jnp.maximum(margin + scores - diag.T, 0.0))
    return jnp.sum(cost_s) + jnp.sum(cost_im)


if __name__ == "__main__":
    # Case 1: module-default config, single-tile grid (batchsize=8, subspace=32).
    B, D = 8, 32
    ks, kim = jax.random.split(jax.random.PRNGKey(0))
    s = jax.random.normal(ks, (B, D), dtype=jnp.float32)
    im = jax.random.normal(kim, (B, D), dtype=jnp.float32)
    out = jax.block_until_ready(margin_ranking_loss(s, im, margin=0.0))
    ref = jax.block_until_ready(_reference(s, im, margin=0.0))
    assert jnp.allclose(out, ref, rtol=1e-4, atol=1e-4), (out, ref)

    # Case 2: multi-tile grid (4 row tiles) with a non-zero margin.
    B2, D2 = 32, 32
    k1, k2 = jax.random.split(jax.random.PRNGKey(1))
    s2 = jax.random.normal(k1, (B2, D2), dtype=jnp.float32)
    im2 = jax.random.normal(k2, (B2, D2), dtype=jnp.float32)
    out2 = jax.block_until_ready(margin_ranking_loss(s2, im2, margin=0.2, tile_rows=8))
    ref2 = jax.block_until_ready(_reference(s2, im2, margin=0.2))
    assert jnp.allclose(out2, ref2, rtol=1e-4, atol=1e-4), (out2, ref2)

    # Case 3: bf16 inputs -> bf16 MXU operands with f32 accumulation.
    s3, im3 = s2.astype(jnp.bfloat16), im2.astype(jnp.bfloat16)
    out3 = jax.block_until_ready(margin_ranking_loss(s3, im3, margin=0.2, tile_rows=8))
    ref3 = jax.block_until_ready(_reference(s3, im3, margin=0.2))
    assert jnp.allclose(out3, ref3, rtol=5e-2, atol=5e-2), (out3, ref3)

    print("KERNEL_OK")
</pallas_src>

<mosaic_0001>
module attributes {stable_mosaic.version = 11 : i64} {
  func.func @kernel(%arg0: i32, %arg1: memref<8x32xf32, #tpu.memory_space<vmem>>, %arg2: memref<8x32xf32, #tpu.memory_space<vmem>>, %arg3: memref<1x1xf32, #tpu.memory_space<vmem>>, %arg4: memref<8x32xf32, #tpu.memory_space<vmem>>, %arg5: memref<8x1xf32, #tpu.memory_space<vmem>>, %arg6: memref<8x1xf32, #tpu.memory_space<vmem>>, %arg7: memref<1x8xf32, #tpu.memory_space<vmem>>) attributes {dimension_semantics = [#tpu.dimension_semantics<arbitrary>], iteration_bounds = array<i64: 1>, scalar_prefetch = 0 : i64, scratch_operands = 4 : i64, tpu.core_type = #tpu.core_type<tc>, window_params = [{pipeline_mode = #tpu.pipeline_mode<synchronous>, transform_indices = @transform_0, window_bounds = array<i64: 8, 32>}, {pipeline_mode = #tpu.pipeline_mode<synchronous>, transform_indices = @transform_1, window_bounds = array<i64: 8, 32>}, {pipeline_mode = #tpu.pipeline_mode<synchronous>, transform_indices = @transform_2, window_bounds = array<i64: 1, 1>}]} {
    %c0_i32 = arith.constant 0 : i32
    %0 = arith.cmpi eq, %arg0, %c0_i32 : i32
    %1 = arith.extui %0 : i1 to i32
    %c0_i32_0 = arith.constant 0 : i32
    %2 = arith.cmpi ne, %1, %c0_i32_0 : i32
    scf.if %2 {
      %c0_17 = arith.constant 0 : index
      %c0_18 = arith.constant 0 : index
      %40 = vector.load %arg1[%c0_17, %c0_18] : memref<8x32xf32, #tpu.memory_space<vmem>>, vector<8x32xf32>
      %c0_19 = arith.constant 0 : index
      %c0_20 = arith.constant 0 : index
      %41 = vector.load %arg2[%c0_19, %c0_20] : memref<8x32xf32, #tpu.memory_space<vmem>>, vector<8x32xf32>
      %42 = arith.mulf %40, %40 : vector<8x32xf32>
      %cst_21 = arith.constant dense<0.000000e+00> : vector<8xf32>
      %43 = vector.multi_reduction <add>, %42, %cst_21 [1] : vector<8x32xf32> to vector<8xf32>
      %44 = vector.shape_cast %43 : vector<8xf32> to vector<8x1xf32>
      %45 = math.sqrt %44 : vector<8x1xf32>
      %cst_22 = arith.constant 1.100000e-13 : f32
      %46 = vector.broadcast %cst_22 : f32 to vector<8x1xf32>
      %47 = arith.addf %45, %46 : vector<8x1xf32>
      %48 = tpu.reciprocal %47 {approx = true} : vector<8x1xf32> -> vector<8x1xf32>
      %49 = arith.mulf %47, %48 : vector<8x1xf32>
      %cst_23 = arith.constant 2.000000e+00 : f32
      %50 = vector.broadcast %cst_23 : f32 to vector<8x1xf32>
      %51 = arith.subf %50, %49 : vector<8x1xf32>
      %52 = arith.mulf %48, %51 : vector<8x1xf32>
      %53 = arith.mulf %41, %41 : vector<8x32xf32>
      %cst_24 = arith.constant dense<0.000000e+00> : vector<8xf32>
      %54 = vector.multi_reduction <add>, %53, %cst_24 [1] : vector<8x32xf32> to vector<8xf32>
      %55 = vector.shape_cast %54 : vector<8xf32> to vector<8x1xf32>
      %56 = math.sqrt %55 : vector<8x1xf32>
      %cst_25 = arith.constant 1.100000e-13 : f32
      %57 = vector.broadcast %cst_25 : f32 to vector<8x1xf32>
      %58 = arith.addf %56, %57 : vector<8x1xf32>
      %59 = tpu.reciprocal %58 {approx = true} : vector<8x1xf32> -> vector<8x1xf32>
      %60 = arith.mulf %58, %59 : vector<8x1xf32>
      %cst_26 = arith.constant 2.000000e+00 : f32
      %61 = vector.broadcast %cst_26 : f32 to vector<8x1xf32>
      %62 = arith.subf %61, %60 : vector<8x1xf32>
      %63 = arith.mulf %59, %62 : vector<8x1xf32>
      %64 = vector.broadcast %52 : vector<8x1xf32> to vector<8x32xf32>
      %65 = arith.mulf %40, %64 : vector<8x32xf32>
      %66 = vector.broadcast %63 : vector<8x1xf32> to vector<8x32xf32>
      %67 = arith.mulf %41, %66 : vector<8x32xf32>
      %c0_27 = arith.constant 0 : index
      %c0_28 = arith.constant 0 : index
      %68 = vector.load %arg4[%c0_27, %c0_28] : memref<8x32xf32, #tpu.memory_space<vmem>>, vector<8x32xf32>
      tpu.vector_store %arg4[%c0_27, %c0_28], %65 {strides = array<i32>} : memref<8x32xf32, #tpu.memory_space<vmem>>, vector<8x32xf32>,
      %c0_29 = arith.constant 0 : index
      %c0_30 = arith.constant 0 : index
      %69 = vector.load %arg5[%c0_29, %c0_30] : memref<8x1xf32, #tpu.memory_space<vmem>>, vector<8x1xf32>
      tpu.vector_store %arg5[%c0_29, %c0_30], %63 {strides = array<i32>} : memref<8x1xf32, #tpu.memory_space<vmem>>, vector<8x1xf32>,
      %70 = arith.mulf %67, %65 : vector<8x32xf32>
      %cst_31 = arith.constant dense<0.000000e+00> : vector<8xf32>
      %71 = vector.multi_reduction <add>, %70, %cst_31 [1] : vector<8x32xf32> to vector<8xf32>
      %72 = vector.shape_cast %71 : vector<8xf32> to vector<8x1xf32>
      %c0_32 = arith.constant 0 : index
      %c0_33 = arith.constant 0 : index
      %73 = vector.load %arg6[%c0_32, %c0_33] : memref<8x1xf32, #tpu.memory_space<vmem>>, vector<8x1xf32>
      tpu.vector_store %arg6[%c0_32, %c0_33], %72 {strides = array<i32>} : memref<8x1xf32, #tpu.memory_space<vmem>>, vector<8x1xf32>,
      %cst_34 = arith.constant 1.000000e+00 : f32
      %74 = vector.broadcast %cst_34 : f32 to vector<1x32xf32>
      %cst_35 = arith.constant dense<0.000000e+00> : vector<1x8xf32>
      %75 = tpu.matmul %74, %70, %cst_35 {dimension_numbers = #tpu.dot_dimension_numbers<[1], [1], [0], [0], [0, 0, 1, 0], [], []>} : vector<1x32xf32>, vector<8x32xf32>, vector<1x8xf32> -> vector<1x8xf32>
      %c0_36 = arith.constant 0 : index
      %c0_37 = arith.constant 0 : index
      %76 = vector.load %arg7[%c0_36, %c0_37] : memref<1x8xf32, #tpu.memory_space<vmem>>, vector<1x8xf32>
      tpu.vector_store %arg7[%c0_36, %c0_37], %75 {strides = array<i32>} : memref<1x8xf32, #tpu.memory_space<vmem>>, vector<1x8xf32>,
      %cst_38 = arith.constant 0.000000e+00 : f32
      %77 = vector.broadcast %cst_38 : f32 to vector<1x1xf32>
      %c0_39 = arith.constant 0 : index
      %c0_40 = arith.constant 0 : index
      %78 = vector.load %arg3[%c0_39, %c0_40] : memref<1x1xf32, #tpu.memory_space<vmem>>, vector<1x1xf32>
      tpu.vector_store %arg3[%c0_39, %c0_40], %77 {strides = array<i32>} : memref<1x1xf32, #tpu.memory_space<vmem>>, vector<1x1xf32>,
    } else {
    }
    %c8_i32 = arith.constant 8 : i32
    %3 = arith.muli %arg0, %c8_i32 : i32
    %4 = tpu.assume_multiple %3, 8 : i32
    %5 = arith.index_cast %4 : i32 to index
    %c0 = arith.constant 0 : index
    %6 = vector.load %arg2[%5, %c0] : memref<8x32xf32, #tpu.memory_space<vmem>>, vector<8x32xf32>
    %7 = arith.index_cast %4 : i32 to index
    %c0_1 = arith.constant 0 : index
    %8 = vector.load %arg5[%7, %c0_1] : memref<8x1xf32, #tpu.memory_space<vmem>>, vector<8x1xf32>
    %9 = vector.broadcast %8 : vector<8x1xf32> to vector<8x32xf32>
    %10 = arith.mulf %6, %9 : vector<8x32xf32>
    %c0_2 = arith.constant 0 : index
    %c0_3 = arith.constant 0 : index
    %11 = vector.load %arg4[%c0_2, %c0_3] : memref<8x32xf32, #tpu.memory_space<vmem>>, vector<8x32xf32>
    %cst = arith.constant dense<0.000000e+00> : vector<8x8xf32>
    %12 = tpu.matmul %10, %11, %cst {dimension_numbers = #tpu.dot_dimension_numbers<[1], [1], [0], [0], [0, 0, 1, 0], [], []>} : vector<8x32xf32>, vector<8x32xf32>, vector<8x8xf32> -> vector<8x8xf32>
    %13 = arith.index_cast %4 : i32 to index
    %c0_4 = arith.constant 0 : index
    %14 = vector.load %arg6[%13, %c0_4] : memref<8x1xf32, #tpu.memory_space<vmem>>, vector<8x1xf32>
    %c0_5 = arith.constant 0 : index
    %c0_6 = arith.constant 0 : index
    %15 = vector.load %arg7[%c0_5, %c0_6] : memref<1x8xf32, #tpu.memory_space<vmem>>, vector<1x8xf32>
    %16 = vector.broadcast %14 : vector<8x1xf32> to vector<8x8xf32>
    %17 = arith.subf %12, %16 : vector<8x8xf32>
    %cst_7 = arith.constant 0.000000e+00 : f32
    %18 = vector.broadcast %cst_7 : f32 to vector<8x8xf32>
    %19 = arith.maximumf %17, %18 : vector<8x8xf32>
    %20 = vector.broadcast %15 : vector<1x8xf32> to vector<8x8xf32>
    %21 = arith.subf %12, %20 : vector<8x8xf32>
    %cst_8 = arith.constant 0.000000e+00 : f32
    %22 = vector.broadcast %cst_8 : f32 to vector<8x8xf32>
    %23 = arith.maximumf %21, %22 : vector<8x8xf32>
    %24 = arith.addf %19, %23 : vector<8x8xf32>
    %25 = tpu.iota {dimensions = array<i32: 0>} : vector<8x8xi32>
    %c8_i32_9 = arith.constant 8 : i32
    %26 = arith.muli %arg0, %c8_i32_9 : i32
    %27 = vector.broadcast %26 : i32 to vector<8x8xi32>
    %28 = arith.addi %25, %27 : vector<8x8xi32>
    %29 = tpu.iota {dimensions = array<i32: 1>} : vector<8x8xi32>
    %30 = arith.cmpi eq, %28, %29 : vector<8x8xi32>
    %cst_10 = arith.constant 0.000000e+00 : f32
    %31 = vector.broadcast %cst_10 : f32 to vector<8x8xf32>
    %32 = arith.select %30, %31, %24 : vector<8x8xi1>, vector<8x8xf32>
    %cst_11 = arith.constant dense<0.000000e+00> : vector<8xf32>
    %33 = vector.multi_reduction <add>, %32, %cst_11 [1] : vector<8x8xf32> to vector<8xf32>
    %34 = vector.shape_cast %33 : vector<8xf32> to vector<8x1xf32>
    %cst_12 = arith.constant dense<0.000000e+00> : vector<1xf32>
    %35 = vector.multi_reduction <add>, %34, %cst_12 [0] : vector<8x1xf32> to vector<1xf32>
    %36 = vector.shape_cast %35 : vector<1xf32> to vector<1x1xf32>
    %c0_13 = arith.constant 0 : index
    %c0_14 = arith.constant 0 : index
    %37 = vector.load %arg3[%c0_13, %c0_14] : memref<1x1xf32, #tpu.memory_space<vmem>>, vector<1x1xf32>
    %38 = arith.addf %37, %36 : vector<1x1xf32>
    %c0_15 = arith.constant 0 : index
    %c0_16 = arith.constant 0 : index
    %39 = vector.load %arg3[%c0_15, %c0_16] : memref<1x1xf32, #tpu.memory_space<vmem>>, vector<1x1xf32>
    tpu.vector_store %arg3[%c0_15, %c0_16], %38 {strides = array<i32>} : memref<1x1xf32, #tpu.memory_space<vmem>>, vector<1x1xf32>,
    return
  }
  func.func @transform_0(%arg0: i32) -> (i32, i32) {
    %c0_i32 = arith.constant 0 : i32
    %c0_i32_0 = arith.constant 0 : i32
    %c0_i32_1 = arith.constant 0 : i32
    return %c0_i32, %c0_i32_0 : i32, i32
  }
  func.func @transform_1(%arg0: i32) -> (i32, i32) {
    %c0_i32 = arith.constant 0 : i32
    %c0_i32_0 = arith.constant 0 : i32
    %c0_i32_1 = arith.constant 0 : i32
    return %c0_i32, %c0_i32_0 : i32, i32
  }
  func.func @transform_2(%arg0: i32) -> (i32, i32) {
    %c0_i32 = arith.constant 0 : i32
    %c0_i32_0 = arith.constant 0 : i32
    %c0_i32_1 = arith.constant 0 : i32
    return %c0_i32, %c0_i32_0 : i32, i32
  }
}

</mosaic_0001>

<bundles_post_ra>
// kernel: tpu_custom_call.1
= control target key start
LH: loop header
LB: loop body
LE: loop exit
PB: predicated region body
PF: predicated region fallthrough
CT: control target
= control target key end

     0   :  { %7 = vsyncpa [#allocation7], 0  ;;  %s495_s0 = inlined_call_operand.hbm [shape: f32[8,32], index: 0, kind: input, shape index: {}]   ;;  %s496_s1 = inlined_call_operand.hbm [shape: f32[8,32], index: 1, kind: input, shape index: {}]   ;;  %s497_s2 = inlined_call_operand.hbm [shape: f32[1,1], index: 2, kind: output, shape index: {}]  }
   0x1   :  { %8 = vsyncpa [#allocation10], 0 }
   0x2   :  { %9 = vsyncpa [#allocation8], 0  ;;  %s419_s9 = smov [#allocation6]   ;;  %s420_s11 = smov [#allocation9]  }
   0x3   :  { %s16_s10 = sshll.u32 %s419_s9, 4  ;;  %s26_s12 = sshll.u32 %s420_s11, 4  ;;  %s17_s10 = int_to_ptr.vmem [resolvable:$true] %s16_s10  ;;  %s27_s12 = int_to_ptr.vmem [resolvable:$true] %s26_s12 }
   0x4   :  { %s347_s15 = scalar_lea.hbm %s495_s0, 128 }
   0x5   :  { %p348_p0 = scmp.ne.s32.totalorder %s495_s0, %s347_s15  ;;  %p351_p1 = scmp.lt.u32.totalorder %s347_s15, %s495_s0 }
   0x7   :  { %p353_p2 = pnand %p351_p1, %p348_p0 }
   0x9   :  { %356 = shalt.err (!%p353_p2)
}
   0xa   :  { %s357_s20 = scalar_lea.vmem %s17_s10, 128  ;;  %p362_p4 = scmp.lt.s32.totalorder %s17_s10, %s17_s10 }
   0xb   :  { %p358_p3 = scmp.ne.s32.totalorder %s17_s10, %s357_s20  ;;  %p363_p5 = scmp.lt.s32.totalorder %s357_s20, %s357_s20 }
   0xd   :  { %p364_p6 = por %p363_p5, %p362_p4 }
   0xf   :  { %p365_p7 = pnand %p364_p6, %p358_p3 }
  0x11   :  { %368 = shalt.err (!%p365_p7)
}
  0x12   :  { %19 = dma.hbm_to_vmem [thread:$0]  %s495_s0, 128, %s17_s10, [#allocation7]  }
  0x13   :  { %s369_s25 = scalar_lea.hbm %s496_s1, 128 }
  0x14   :  { %p370_p8 = scmp.ne.s32.totalorder %s496_s1, %s369_s25  ;;  %p373_p9 = scmp.lt.u32.totalorder %s369_s25, %s496_s1 }
  0x16   :  { %p375_p10 = pnand %p373_p9, %p370_p8 }
  0x18   :  { %378 = shalt.err (!%p375_p10)
}
  0x19   :  { %s379_s30 = scalar_lea.vmem %s27_s12, 128  ;;  %p384_p12 = scmp.lt.s32.totalorder %s27_s12, %s27_s12 }
  0x1a   :  { %p380_p11 = scmp.ne.s32.totalorder %s27_s12, %s379_s30  ;;  %p385_p13 = scmp.lt.s32.totalorder %s379_s30, %s379_s30 }
  0x1c   :  { %p386_p0 = por %p385_p13, %p384_p12 }
  0x1e   :  { %p387_p1 = pnand %p386_p0, %p380_p11 }
  0x20   :  { %390 = shalt.err (!%p387_p1)
}
  0x21   :  { %29 = dma.hbm_to_vmem [thread:$0]  %s496_s1, 128, %s27_s12, [#allocation10]  }
  0x22   :  { %413 = dma.done.wait [#allocation7], 128  }
  0x23   :  { %414 = vsyncadd [#allocation7], 4294967168 }
  0x24   :  { %415 = dma.done.wait [#allocation10], 128  }
  0x25   :  { %416 = vsyncadd [#allocation10], 4294967168  ;;  %v465_v0 = vld [vmem:[#allocation9] sm:$0xff]  ;;  %vm43_vm0 = vcmask 261120   ;;  %v40_v1 = vld [vmem:[#allocation6] sm:$0xff]  ;;  %vm163_vm1 = vcmask 0   ;;  %v273_v43 = vlaneseq }
  0x26   :  { %v59_v2 = vmul.f32 %v465_v0, %v465_v0  ;;  %v42_v3 = vmul.f32 %v40_v1, %v40_v1  ;;  %v421_v6 = vmov 0   ;;  %v422_v7 = vmov 0.0   ;;  %s425_s1 = smov [#allocation11]  }
  0x27   :  { %337 = vset.pattern.permute.xlu1 %v421_v6  ;;  %320 = vmatprep.subr.mxu0 %v422_v7  ;;  %164 = vst.msk [vmem:[#allocation11] sm:$0x1] %vm163_vm1, %v422_v7  ;;  %vm423_vm2 = vmmov 0   ;;  %vm78_vm7 = vcmask 7168   ;;  %v424_v34 = vmov 1.0   ;;  %vm161_vm8 = vcmask 57344  }
  0x28   :  { %v60_v4 = vsel %vm43_vm0, %v59_v2, 0.0  ;;  %v44_v5 = vsel %vm43_vm0, %v42_v3, 0.0  ;;  %325 = vmatprep.subr.mxu1 %v422_v7  ;;  %338 = vset.pattern.permute.xlu0 %v421_v6  ;;  %v274_v47 = vshrl.u32 %v273_v43, 7  ;;  %v278_v48 = vand.u32 127, %v273_v43  ;;  %s301_s4 = sshll.u32 %s425_s1, 4  ;;  %s302_s4 = int_to_ptr.vmem [resolvable:$true] %s301_s4 }
  0x29   :  { %61 = vadd.xlane.f32.xlu0 %v60_v4  ;;  %322 = vmatprep.mubr.msk.f32.mxu0 %vm423_vm2, %v422_v7  ;;  %vm281_vm10 = vcmask 64512   ;;  %s391_s5 = scalar_lea.vmem %s302_s4, 16  ;;  %s395_s6 = scalar_lea.vmem %s302_s4, 32 }
  0x2a   :  { %327 = vmatprep.mubr.msk.f32.mxu1 %vm423_vm2, %v422_v7  ;;  %vm279_vm9 = vcmp.eq.s32.totalorder %v274_v47, %v278_v48  ;;  %p392_p2 = scmp.ne.s32.totalorder %s302_s4, %s391_s5  ;;  %p396_p3 = scmp.lt.s32.totalorder %s302_s4, %s302_s4 }
  0x2b   :  { %p397_p4 = scmp.lt.s32.totalorder %s395_s6, %s391_s5 }
  0x2d   :  { %45 = vadd.xlane.f32.xlu0 %v44_v5  ;;  %p398_p5 = por %p397_p4, %p396_p3 }
  0x2e   :  { %v291_v63 = vld [vmem:[#allocation11] sm:$0x1] }
  0x2f   :  { %p399_p6 = pnand %p398_p5, %p392_p2 }
  0xb6   :  { %v62_v8 = vpop.xlane.xlu0 %61 }
  0xb7   :  { %339 = vrsqrt.f32 %v62_v8  ;;  %vm65_vm3 = vcmp.eq.f32.partialorder %v62_v8, inf  ;;  %v68_v12 = vand.u32 2147483648, %v62_v8  ;;  %vm67_vm4 = vcmp.eq.f32.partialorder %v62_v8, 0.0 }
  0xba   :  { %v46_v9 = vpop.xlane.xlu0 %45 }
  0xbb   :  { %341 = vrsqrt.f32 %v46_v9  ;;  %vm49_vm5 = vcmp.eq.f32.partialorder %v46_v9, inf  ;;  %v52_v16 = vand.u32 2147483648, %v46_v9  ;;  %vm51_vm6 = vcmp.eq.f32.partialorder %v46_v9, 0.0 }
  0xc1   :  { %v340_v10 = vpop.eup %339 }
  0xc2   :  { %v64_v11 = vmul.f32 %v340_v10, %v62_v8 }
  0xc4   :  { %v66_v13 = vsel %vm65_vm3, %v62_v8, %v64_v11 }
  0xc5   :  { %v342_v14 = vpop.eup %341  ;;  %v69_v15 = vsel %vm67_vm4, %v68_v12, %v66_v13 }
  0xc6   :  { %v70_v17 = vadd.f32 1.1e-13, %v69_v15  ;;  %v48_v18 = vmul.f32 %v342_v14, %v46_v9 }
  0xc8   :  { %343 = vrcp.f32 %v70_v17  ;;  %v50_v19 = vsel %vm49_vm5, %v46_v9, %v48_v18 }
  0xc9   :  { %v53_v20 = vsel %vm51_vm6, %v52_v16, %v50_v19 }
  0xca   :  { %v54_v21 = vadd.f32 1.1e-13, %v53_v20 }
  0xcc   :  { %345 = vrcp.f32 %v54_v21 }
  0xd2   :  { %v344_v22 = vpop.eup %343 }
  0xd3   :  { %v72_v23 = vmul.f32 %v344_v22, %v70_v17 }
  0xd5   :  { %v73_v24 = vsub.f32 2.0, %v72_v23 }
  0xd6   :  { %v346_v25 = vpop.eup %345 }
  0xd7   :  { %v74_v26 = vmul.f32 %v344_v22, %v73_v24  ;;  %v56_v27 = vmul.f32 %v346_v25, %v54_v21 }
  0xd9   :  { %79 = vst.msk [vmem:[#allocation3] sm:$0xff] %vm78_vm7, %v74_v26  ;;  %v57_v28 = vsub.f32 2.0, %v56_v27  ;;  %v76_v31 = vmul.f32 %v74_v26, %v465_v0 }
  0xdb   :  { %v58_v29 = vmul.f32 %v346_v25, %v57_v28 }
  0xdd   :  { %v75_v30 = vmul.f32 %v58_v29, %v40_v1 }
  0xdf   :  { %77 = vst.msk [vmem:[#allocation2] sm:$0xff] %vm43_vm0, %v75_v30  ;;  %v80_v32 = vmul.f32 %v76_v31, %v75_v30 }
  0xe0   :  { %v169_v33 = vld [vmem:[#allocation3] sm:$0xff] }
  0xe1   :  { %172 = vperm.xlu1 %337, %v169_v33   ;;  %321 = vmatpush3.xpose.msk.msra.mxu0 %vm43_vm0, %v80_v32  ;;  %v81_v36 = vsel %vm43_vm0, %v80_v32, 0.0 }
  0xe4   :  { %323 = vmatmul.mubr.msk.f32.vlgmr.msra.gmra.mrb[0].mxu0 %vm43_vm0, %v424_v34 }
  0xe6   :  { %v176_v35 = vld [vmem:[#allocation2] sm:$0xff] }
  0xe7   :  { %326 = vmatpush3.xpose.msk.msra.mxu1 %vm43_vm0, %v176_v35 }
 0x105   :  { %82 = vadd.xlane.f32.xlu1 %v81_v36 }
 0x160   :  { %v173_v37 = vpop.permute.xlu1 %172 }
 0x161   :  { %v175_v38 = vmul.f32 %v173_v37, %v465_v0 }
 0x163   :  { %328 = vmatmul.mubr.msk.f32.vlgmr.msra.gmra.mrb[0].mxu1 %vm43_vm0, %v175_v38 }
 0x192   :  { %v83_v39 = vpop.xlane.xlu1 %82 }
 0x193   :  { %84 = vst.msk [vmem:[#allocation4] sm:$0xff] %vm78_vm7, %v83_v39 }
 0x19a   :  { %v255_v40 = vld [vmem:[#allocation4] sm:$0xff] }
 0x19b   :  { %259 = vperm.xlu0 %338, %v255_v40  }
 0x1b7   :  { %v157_v41 = vpop.f32.mrb[0].mxu0 }
 0x1b8   :  { %162 = vst.msk [vmem:[#allocation5] sm:$0x1] %vm161_vm8, %v157_v41  ;;  %v324_v42 = vpop.f32.mrb[1].mxu0 }
 0x1bf   :  { %v315_v44 = vld [vmem:[#allocation5] ss:$0 sm:$0xff] }
 0x21a   :  { %v260_v45 = vpop.permute.xlu0 %259 }
 0x236   :  { %v250_v46 = vpop.f32.mrb[0].mxu1 }
 0x237   :  { %v262_v49 = vsub.f32 %v250_v46, %v260_v45  ;;  %v270_v50 = vsub.f32 %v250_v46, %v315_v44  ;;  %v329_v51 = vpop.f32.mrb[1].mxu1 }
 0x239   :  { %v263_v52 = vmax.f32 %v262_v49, 0.0  ;;  %v271_v53 = vmax.f32 %v270_v50, 0.0 }
 0x23b   :  { %v272_v54 = vadd.f32 %v271_v53, %v263_v52 }
 0x23d   :  { %v280_v55 = vsel %vm279_vm9, 0.0, %v272_v54 }
 0x23e   :  { %v282_v56 = vsel %vm281_vm10, %v280_v55, 0.0 }
 0x23f   :  { %283 = vadd.xlane.f32.xlu1 %v282_v56 }
 0x2cc   :  { %v284_v57 = vpop.xlane.xlu1 %283 }
 0x2cd   :  { %v285_v58 = vrot.slane %v284_v57, 4 }
 0x2cf   :  { %v286_v59 = vadd.f32 %v285_v58, %v284_v57 }
 0x2d1   :  { %v287_v60 = vrot.slane %v286_v59, 2 }
 0x2d3   :  { %v288_v61 = vadd.f32 %v287_v60, %v286_v59 }
 0x2d5   :  { %v289_v62 = vrot.slane %v288_v61, 1 }
 0x2d7   :  { %v290_v0 = vadd.f32 %v289_v62, %v288_v61 }
 0x2d9   :  { %v292_v1 = vadd.f32 %v291_v63, %v290_v0 }
 0x2db   :  { %294 = vst.msk [vmem:[#allocation11] sm:$0x1] %vm163_vm1, %v292_v1 }
 0x2dc   :  { %402 = shalt.err (!%p399_p6)
}
 0x2dd   :  { %s403_s9 = scalar_lea.hbm %s497_s2, 16 }
 0x2de   :  { %p404_p7 = scmp.ne.s32.totalorder %s497_s2, %s403_s9  ;;  %p407_p8 = scmp.lt.u32.totalorder %s403_s9, %s497_s2 }
 0x2e0   :  { %p409_p9 = pnand %p407_p8, %p404_p7 }
 0x2e2   :  { %412 = shalt.err (!%p409_p9)
}
 0x2e3   :  { %304 = dma.vmem_to_hbm [thread:$0]  %s302_s4, 16, %s497_s2, [#allocation8]  }
 0x2e4   :  { %417 = dma.done.wait [#allocation8], 16  }
 0x2e5   :  { %418 = vsyncadd [#allocation8], 4294967280 }
 0x2e6   :  { %308 = vsyncpa [#allocation7], 1 }
 0x2e7   :  { %309 = vsyncpa [#allocation10], 1 }
 0x2e8   :  { %310 = vsyncpa [#allocation8], 1 }

</bundles_post_ra>
